<compile_context>
chip_gen: v5e
topology: v5e:2x2
jax: 0.10.0
libtpu: 0.0.40
codegen_flags: <defaults>
</compile_context>

<pallas_src>
import jax
import jax.numpy as jnp
from jax.experimental import pallas as pl
from jax.experimental.pallas import tpu as pltpu


def _round_up(x, m):
    return (x + m - 1) // m * m


def _vmem_capacity_bytes():
    """Physical VMEM per core; conservative 64 MiB (v7x) if unknown."""
    try:
        info = pltpu.get_tpu_info()
        cap = getattr(info, "vmem_capacity_bytes", None)
        if cap:
            return int(cap)
    except Exception:
        pass
    return 64 << 20


def _generator_kernel_cached(x_ref, w_ref, b_ref, o_ref, m_ref, l_ref, lg_ref):
    # x_ref: (tm, d_model) bf16   w_ref: (d_model, tn) bf16   b_ref: (1, tn) f32
    # o_ref: (tm, tn)   m_ref/l_ref: (tm, 1) f32   lg_ref: (n_vocab, tm, tn) logits cache
    phase = pl.program_id(1)   # 0: matmul + logsumexp accumulation, 1: write output
    kv = pl.program_id(2)      # vocab tile index
    last = pl.num_programs(2) - 1

    @pl.when(jnp.logical_and(phase == 0, kv == 0))
    def _():
        m_ref[...] = jnp.full_like(m_ref, -jnp.inf)
        l_ref[...] = jnp.zeros_like(l_ref)

    @pl.when(phase == 0)
    def _():
        logits = jnp.dot(x_ref[...], w_ref[...],
                         preferred_element_type=jnp.float32) + b_ref[...]
        lg_ref[kv] = logits.astype(lg_ref.dtype)   # cache: no phase-1 recompute
        m_prev = m_ref[...]
        m_new = jnp.maximum(m_prev, jnp.max(logits, axis=-1, keepdims=True))
        l_ref[...] = (l_ref[...] * jnp.exp(m_prev - m_new)
                      + jnp.sum(jnp.exp(logits - m_new), axis=-1, keepdims=True))
        m_ref[...] = m_new

    @pl.when(jnp.logical_and(phase == 0, kv == last))
    def _():
        # Finalize once per row tile: m_ref now holds the logsumexp.
        m_ref[...] = m_ref[...] + jnp.log(l_ref[...])

    @pl.when(phase == 1)
    def _():
        o_ref[...] = (lg_ref[kv].astype(jnp.float32) - m_ref[...]).astype(o_ref.dtype)


def _generator_kernel_recompute(x_ref, w_ref, b_ref, o_ref, m_ref, l_ref):
    # Fallback for vocab too large to cache: phase 1 recomputes the logits.
    phase = pl.program_id(1)
    kv = pl.program_id(2)
    last = pl.num_programs(2) - 1

    logits = jnp.dot(x_ref[...], w_ref[...],
                     preferred_element_type=jnp.float32) + b_ref[...]

    @pl.when(jnp.logical_and(phase == 0, kv == 0))
    def _():
        m_ref[...] = jnp.full_like(m_ref, -jnp.inf)
        l_ref[...] = jnp.zeros_like(l_ref)

    @pl.when(phase == 0)
    def _():
        m_prev = m_ref[...]
        m_new = jnp.maximum(m_prev, jnp.max(logits, axis=-1, keepdims=True))
        l_ref[...] = (l_ref[...] * jnp.exp(m_prev - m_new)
                      + jnp.sum(jnp.exp(logits - m_new), axis=-1, keepdims=True))
        m_ref[...] = m_new

    @pl.when(jnp.logical_and(phase == 0, kv == last))
    def _():
        m_ref[...] = m_ref[...] + jnp.log(l_ref[...])

    @pl.when(phase == 1)
    def _():
        o_ref[...] = (logits - m_ref[...]).astype(o_ref.dtype)


def generator_forward(x, w, b, *, tm=None, tn=2048, out_dtype=None,
                      force_recompute=False):
    """x: (batch, seq, d_model); w: (d_model, vocab); b: (vocab,)."""
    batch, seq, d_model = x.shape
    dw, vocab = w.shape
    assert dw == d_model, "weight must be (d_model, vocab)"
    if out_dtype is None:
        out_dtype = x.dtype  # f32 by default (exact log-probs); bf16 halves writeback.
    out_bytes = jnp.dtype(out_dtype).itemsize

    # --- hardware-aware VMEM budget -----------------------------------------
    vmem_cap = _vmem_capacity_bytes()                  # 64 MiB (v7x) / 128 MiB (v5e/v6e)
    budget = min(vmem_cap - (16 << 20), int(vmem_cap * 0.78))   # ~48 MiB / ~100 MiB
    small_vmem_part = vmem_cap <= (64 << 20)           # v7x-class: 2 TCs, 64 MiB VMEM

    if tm is None:
        tm = 512 if small_vmem_part else 1024

    M = batch * seq

    # Vocab tile: lane-dense (multiple of 128), capped so the double-buffered
    # bf16 weight tile stays within ~1/3 of the VMEM budget (large-d_model safe).
    tn_cap = max(128, ((budget // 3) // (4 * d_model)) // 128 * 128)
    tn_eff = max(128, min(_round_up(vocab, 128), tn, tn_cap))
    Vp = _round_up(vocab, tn_eff)
    n_vocab = Vp // tn_eff

    # Row tile.
    tm_eff = min(tm, _round_up(M, 8))
    tm_eff = max(8, _round_up(tm_eff, 8))
    if small_vmem_part:
        # Guarantee >=2 row blocks where possible so both TensorCores get work.
        while _round_up(M, tm_eff) // tm_eff < 2 and tm_eff > 8:
            tm_eff = max(8, _round_up(tm_eff // 2, 8))

    def base_vmem(tm_, tn_):
        return (2 * tm_ * d_model * 2          # x tile (bf16, double-buffered)
                + 2 * d_model * tn_ * 2        # weight tile (bf16)
                + 2 * tn_ * 4                  # bias tile (f32)
                + 2 * tm_ * tn_ * out_bytes    # output tile
                + 2 * tm_ * tn_ * 4            # in-kernel f32 logits/exp temporaries
                + 2 * tm_ * 4)                 # (tm,1) m/l scratch

    # Shrink tm until the non-cached working set fits the budget.
    while base_vmem(tm_eff, tn_eff) > budget and tm_eff > 8:
        tm_eff = max(8, _round_up(tm_eff // 2, 8))

    # Prefer caching the phase-0 logits in VMEM (kills the phase-1 matmul and
    # the second weight pass).  Search tm from its current value down to 256;
    # prefer an f32 cache, fall back to bf16, else recompute.
    cache_dtype = None
    if not force_recompute:
        t = tm_eff
        while True:
            for cand in (jnp.float32, jnp.bfloat16):
                if base_vmem(t, tn_eff) + t * Vp * jnp.dtype(cand).itemsize <= budget:
                    cache_dtype = cand
                    break
            if cache_dtype is not None:
                tm_eff = t
                break
            nt = max(8, _round_up(t // 2, 8))
            if nt >= t or nt < 256:
                break
            t = nt

    Mp = _round_up(M, tm_eff)
    n_rows = Mp // tm_eff

    # --- data prep (bf16 MXU inputs; weight cast skipped if already bf16) ----
    x2 = x.reshape(M, d_model)
    if x2.dtype != jnp.bfloat16:
        x2 = x2.astype(jnp.bfloat16)
    w2 = w if w.dtype == jnp.bfloat16 else w.astype(jnp.bfloat16)
    b2 = b.reshape(1, vocab).astype(jnp.float32)

    if Mp != M:   # pad rows (zero rows are harmless; sliced off below)
        x2 = jnp.pad(x2, ((0, Mp - M), (0, 0)))
    if Vp != vocab:
        # Zero weight columns + very negative *finite* bias: padded columns
        # carry ~zero probability mass and never poison max/sum (NaN-free).
        w2 = jnp.pad(w2, ((0, 0), (0, Vp - vocab)))
        b2 = jnp.pad(b2, ((0, 0), (0, Vp - vocab)), constant_values=-1e30)

    # --- specs / scratch ------------------------------------------------------
    if cache_dtype is not None:
        kernel = _generator_kernel_cached
        in_specs = [
            pl.BlockSpec((tm_eff, d_model), lambda i, p, k: (i, 0)),       # x (row resident)
            pl.BlockSpec((d_model, tn_eff), lambda i, p, k: (0, k * (1 - p))),  # w parks in phase 1
            pl.BlockSpec((1, tn_eff), lambda i, p, k: (0, k * (1 - p))),        # bias parks too
        ]
        scratch_shapes = [
            pltpu.VMEM((tm_eff, 1), jnp.float32),               # running max -> lse
            pltpu.VMEM((tm_eff, 1), jnp.float32),               # running sum of exp
            pltpu.VMEM((n_vocab, tm_eff, tn_eff), cache_dtype),  # logits cache
        ]
    else:
        kernel = _generator_kernel_recompute
        in_specs = [
            pl.BlockSpec((tm_eff, d_model), lambda i, p, k: (i, 0)),
            pl.BlockSpec((d_model, tn_eff), lambda i, p, k: (0, k)),
            pl.BlockSpec((1, tn_eff), lambda i, p, k: (0, k)),
        ]
        scratch_shapes = [
            pltpu.VMEM((tm_eff, 1), jnp.float32),
            pltpu.VMEM((tm_eff, 1), jnp.float32),
        ]

    vmem_est = base_vmem(tm_eff, tn_eff)
    if cache_dtype is not None:
        vmem_est += tm_eff * Vp * jnp.dtype(cache_dtype).itemsize

    cp_kwargs = dict(dimension_semantics=("parallel", "arbitrary", "arbitrary"))
    if vmem_est > (12 << 20):
        cp_kwargs["vmem_limit_bytes"] = int(min(vmem_cap - (8 << 20),
                                                vmem_est + (8 << 20)))

    out = pl.pallas_call(
        kernel,
        out_shape=jax.ShapeDtypeStruct((Mp, Vp), out_dtype),
        grid_spec=pltpu.PrefetchScalarGridSpec(
            num_scalar_prefetch=0,
            # (row tiles, phase {0: logsumexp, 1: write}, vocab tiles)
            grid=(n_rows, 2, n_vocab),
            in_specs=in_specs,
            # Output block parks on vocab-block 0 during phase 0 (never written
            # there); the index only advances in phase 1 -> each output block is
            # written back exactly once, lane-dense.
            out_specs=pl.BlockSpec((tm_eff, tn_eff), lambda i, p, k: (i, k * p)),
            scratch_shapes=scratch_shapes,
        ),
        compiler_params=pltpu.CompilerParams(**cp_kwargs),
    )(x2, w2, b2)

    return out[:M, :vocab].reshape(batch, seq, vocab)


def init_generator_params(key, d_model, vocab):
    # mimic nn.Linear default init: U(-1/sqrt(d_model), 1/sqrt(d_model))
    kw, kb = jax.random.split(key)
    bound = 1.0 / jnp.sqrt(d_model)
    w = jax.random.uniform(kw, (d_model, vocab), jnp.float32, -bound, bound)
    b = jax.random.uniform(kb, (vocab,), jnp.float32, -bound, bound)
    return w, b


if __name__ == "__main__":
    batch, seq, d_model, vocab = 2, 8, 32, 128
    key = jax.random.PRNGKey(0)
    kx, kp = jax.random.split(key)
    x = jax.random.normal(kx, (batch, seq, d_model), jnp.float32)
    w, b = init_generator_params(kp, d_model, vocab)

    out = jax.block_until_ready(generator_forward(x, w, b))
    assert out.shape == (batch, seq, vocab)

    # Reference with the same bf16 rounding the kernel applies to x/w.
    xr = x.astype(jnp.bfloat16).astype(jnp.float32).reshape(-1, d_model)
    wr = w.astype(jnp.bfloat16).astype(jnp.float32)
    ref = jax.nn.log_softmax(xr @ wr + b, axis=-1).reshape(batch, seq, vocab)
    assert jnp.allclose(out, ref, atol=2e-4, rtol=2e-4), float(jnp.max(jnp.abs(out - ref)))

    # Loose sanity check against the pure-f32 reference (only bf16 rounding differs).
    ref_f32 = jax.nn.log_softmax(x @ w + b, axis=-1)
    assert jnp.allclose(out, ref_f32, atol=5e-2, rtol=5e-2)

    # Also exercise the large-vocab fallback path (phase-1 recompute).
    out_rc = jax.block_until_ready(generator_forward(x, w, b, force_recompute=True))
    assert jnp.allclose(out_rc, ref, atol=2e-4, rtol=2e-4)

    print("KERNEL_OK")
</pallas_src>

<mosaic_0001>
module attributes {stable_mosaic.version = 11 : i64} {
  func.func @_generator_kernel_cached(%arg0: i32, %arg1: i32, %arg2: i32, %arg3: memref<8x32xbf16, #tpu.memory_space<vmem>>, %arg4: memref<32x128xbf16, #tpu.memory_space<vmem>>, %arg5: memref<1x128xf32, #tpu.memory_space<vmem>>, %arg6: memref<8x128xf32, #tpu.memory_space<vmem>>, %arg7: memref<8x1xf32, #tpu.memory_space<vmem>>, %arg8: memref<8x1xf32, #tpu.memory_space<vmem>>, %arg9: memref<1x8x128xf32, #tpu.memory_space<vmem>>) attributes {dimension_semantics = [#tpu.dimension_semantics<parallel>, #tpu.dimension_semantics<arbitrary>, #tpu.dimension_semantics<arbitrary>], iteration_bounds = array<i64: 2, 2, 1>, scalar_prefetch = 0 : i64, scratch_operands = 3 : i64, tpu.core_type = #tpu.core_type<tc>, window_params = [{transform_indices = @transform_0, window_bounds = array<i64: 8, 32>}, {transform_indices = @transform_1, window_bounds = array<i64: 32, 128>}, {transform_indices = @transform_2, window_bounds = array<i64: 1, 128>}, {transform_indices = @transform_3, window_bounds = array<i64: 8, 128>}]} {
    %c0_i32 = arith.constant 0 : i32
    %0 = arith.cmpi eq, %arg1, %c0_i32 : i32
    %c0_i32_0 = arith.constant 0 : i32
    %1 = arith.cmpi eq, %arg2, %c0_i32_0 : i32
    %2 = arith.andi %0, %1 : i1
    %3 = arith.extui %2 : i1 to i32
    %c0_i32_1 = arith.constant 0 : i32
    %4 = arith.cmpi ne, %3, %c0_i32_1 : i32
    scf.if %4 {
      %cst = arith.constant 0xFF800000 : f32
      %16 = vector.broadcast %cst : f32 to vector<8x1xf32>
      %c0 = arith.constant 0 : index
      %c0_8 = arith.constant 0 : index
      %17 = vector.load %arg7[%c0, %c0_8] : memref<8x1xf32, #tpu.memory_space<vmem>>, vector<8x1xf32>
      tpu.vector_store %arg7[%c0, %c0_8], %16 {strides = array<i32>} : memref<8x1xf32, #tpu.memory_space<vmem>>, vector<8x1xf32>,
      %cst_9 = arith.constant 0.000000e+00 : f32
      %18 = vector.broadcast %cst_9 : f32 to vector<8x1xf32>
      %c0_10 = arith.constant 0 : index
      %c0_11 = arith.constant 0 : index
      %19 = vector.load %arg8[%c0_10, %c0_11] : memref<8x1xf32, #tpu.memory_space<vmem>>, vector<8x1xf32>
      tpu.vector_store %arg8[%c0_10, %c0_11], %18 {strides = array<i32>} : memref<8x1xf32, #tpu.memory_space<vmem>>, vector<8x1xf32>,
    } else {
    }
    %c0_i32_2 = arith.constant 0 : i32
    %5 = arith.cmpi eq, %arg1, %c0_i32_2 : i32
    %6 = arith.extui %5 : i1 to i32
    %c0_i32_3 = arith.constant 0 : i32
    %7 = arith.cmpi ne, %6, %c0_i32_3 : i32
    scf.if %7 {
      %c0 = arith.constant 0 : index
      %c0_8 = arith.constant 0 : index
      %16 = vector.load %arg3[%c0, %c0_8] : memref<8x32xbf16, #tpu.memory_space<vmem>>, vector<8x32xbf16>
      %c0_9 = arith.constant 0 : index
      %c0_10 = arith.constant 0 : index
      %17 = vector.load %arg4[%c0_9, %c0_10] : memref<32x128xbf16, #tpu.memory_space<vmem>>, vector<32x128xbf16>
      %cst = arith.constant dense<0.000000e+00> : vector<8x128xf32>
      %18 = tpu.matmul %16, %17, %cst {dimension_numbers = #tpu.dot_dimension_numbers<[1], [0], [0], [1], [0, 0, 1, 1], [], []>} : vector<8x32xbf16>, vector<32x128xbf16>, vector<8x128xf32> -> vector<8x128xf32>
      %c0_11 = arith.constant 0 : index
      %c0_12 = arith.constant 0 : index
      %19 = vector.load %arg5[%c0_11, %c0_12] : memref<1x128xf32, #tpu.memory_space<vmem>>, vector<1x128xf32>
      %20 = vector.broadcast %19 : vector<1x128xf32> to vector<8x128xf32>
      %21 = arith.addf %18, %20 : vector<8x128xf32>
      %22 = arith.index_cast %arg2 : i32 to index
      %c0_13 = arith.constant 0 : index
      %c0_14 = arith.constant 0 : index
      %23 = vector.load %arg9[%22, %c0_13, %c0_14] : memref<1x8x128xf32, #tpu.memory_space<vmem>>, vector<1x8x128xf32>
      %24 = vector.shape_cast %23 : vector<1x8x128xf32> to vector<8x128xf32>
      %25 = vector.shape_cast %21 : vector<8x128xf32> to vector<1x8x128xf32>
      tpu.vector_store %arg9[%22, %c0_13, %c0_14], %25 {strides = array<i32>} : memref<1x8x128xf32, #tpu.memory_space<vmem>>, vector<1x8x128xf32>,
      %c0_15 = arith.constant 0 : index
      %c0_16 = arith.constant 0 : index
      %26 = vector.load %arg7[%c0_15, %c0_16] : memref<8x1xf32, #tpu.memory_space<vmem>>, vector<8x1xf32>
      %cst_17 = arith.constant dense<0xFF800000> : vector<8xf32>
      %27 = vector.multi_reduction <maximumf>, %21, %cst_17 [1] : vector<8x128xf32> to vector<8xf32>
      %28 = vector.shape_cast %27 : vector<8xf32> to vector<8x1xf32>
      %29 = arith.maximumf %26, %28 : vector<8x1xf32>
      %c0_18 = arith.constant 0 : index
      %c0_19 = arith.constant 0 : index
      %30 = vector.load %arg8[%c0_18, %c0_19] : memref<8x1xf32, #tpu.memory_space<vmem>>, vector<8x1xf32>
      %31 = arith.subf %26, %29 : vector<8x1xf32>
      %32 = math.exp %31 : vector<8x1xf32>
      %33 = arith.mulf %30, %32 : vector<8x1xf32>
      %34 = vector.broadcast %29 : vector<8x1xf32> to vector<8x128xf32>
      %35 = arith.subf %21, %34 : vector<8x128xf32>
      %36 = math.exp %35 : vector<8x128xf32>
      %cst_20 = arith.constant dense<0.000000e+00> : vector<8xf32>
      %37 = vector.multi_reduction <add>, %36, %cst_20 [1] : vector<8x128xf32> to vector<8xf32>
      %38 = vector.shape_cast %37 : vector<8xf32> to vector<8x1xf32>
      %39 = arith.addf %33, %38 : vector<8x1xf32>
      %c0_21 = arith.constant 0 : index
      %c0_22 = arith.constant 0 : index
      %40 = vector.load %arg8[%c0_21, %c0_22] : memref<8x1xf32, #tpu.memory_space<vmem>>, vector<8x1xf32>
      tpu.vector_store %arg8[%c0_21, %c0_22], %39 {strides = array<i32>} : memref<8x1xf32, #tpu.memory_space<vmem>>, vector<8x1xf32>,
      %c0_23 = arith.constant 0 : index
      %c0_24 = arith.constant 0 : index
      %41 = vector.load %arg7[%c0_23, %c0_24] : memref<8x1xf32, #tpu.memory_space<vmem>>, vector<8x1xf32>
      tpu.vector_store %arg7[%c0_23, %c0_24], %29 {strides = array<i32>} : memref<8x1xf32, #tpu.memory_space<vmem>>, vector<8x1xf32>,
    } else {
    }
    %c0_i32_4 = arith.constant 0 : i32
    %8 = arith.cmpi eq, %arg1, %c0_i32_4 : i32
    %c0_i32_5 = arith.constant 0 : i32
    %9 = arith.cmpi eq, %arg2, %c0_i32_5 : i32
    %10 = arith.andi %8, %9 : i1
    %11 = arith.extui %10 : i1 to i32
    %c0_i32_6 = arith.constant 0 : i32
    %12 = arith.cmpi ne, %11, %c0_i32_6 : i32
    scf.if %12 {
      %c0 = arith.constant 0 : index
      %c0_8 = arith.constant 0 : index
      %16 = vector.load %arg7[%c0, %c0_8] : memref<8x1xf32, #tpu.memory_space<vmem>>, vector<8x1xf32>
      %c0_9 = arith.constant 0 : index
      %c0_10 = arith.constant 0 : index
      %17 = vector.load %arg8[%c0_9, %c0_10] : memref<8x1xf32, #tpu.memory_space<vmem>>, vector<8x1xf32>
      %18 = math.log %17 : vector<8x1xf32>
      %19 = arith.addf %16, %18 : vector<8x1xf32>
      %c0_11 = arith.constant 0 : index
      %c0_12 = arith.constant 0 : index
      %20 = vector.load %arg7[%c0_11, %c0_12] : memref<8x1xf32, #tpu.memory_space<vmem>>, vector<8x1xf32>
      tpu.vector_store %arg7[%c0_11, %c0_12], %19 {strides = array<i32>} : memref<8x1xf32, #tpu.memory_space<vmem>>, vector<8x1xf32>,
    } else {
    }
    %c1_i32 = arith.constant 1 : i32
    %13 = arith.cmpi eq, %arg1, %c1_i32 : i32
    %14 = arith.extui %13 : i1 to i32
    %c0_i32_7 = arith.constant 0 : i32
    %15 = arith.cmpi ne, %14, %c0_i32_7 : i32
    scf.if %15 {
      %16 = arith.index_cast %arg2 : i32 to index
      %c0 = arith.constant 0 : index
      %c0_8 = arith.constant 0 : index
      %17 = vector.load %arg9[%16, %c0, %c0_8] : memref<1x8x128xf32, #tpu.memory_space<vmem>>, vector<1x8x128xf32>
      %18 = vector.shape_cast %17 : vector<1x8x128xf32> to vector<8x128xf32>
      %c0_9 = arith.constant 0 : index
      %c0_10 = arith.constant 0 : index
      %19 = vector.load %arg7[%c0_9, %c0_10] : memref<8x1xf32, #tpu.memory_space<vmem>>, vector<8x1xf32>
      %20 = vector.broadcast %19 : vector<8x1xf32> to vector<8x128xf32>
      %21 = arith.subf %18, %20 : vector<8x128xf32>
      %c0_11 = arith.constant 0 : index
      %c0_12 = arith.constant 0 : index
      %22 = vector.load %arg6[%c0_11, %c0_12] : memref<8x128xf32, #tpu.memory_space<vmem>>, vector<8x128xf32>
      tpu.vector_store %arg6[%c0_11, %c0_12], %21 {strides = array<i32>} : memref<8x128xf32, #tpu.memory_space<vmem>>, vector<8x128xf32>,
    } else {
    }
    return
  }
  func.func @transform_0(%arg0: i32, %arg1: i32, %arg2: i32) -> (i32, i32) {
    %c0_i32 = arith.constant 0 : i32
    %c0_i32_0 = arith.constant 0 : i32
    return %arg0, %c0_i32 : i32, i32
  }
  func.func @transform_1(%arg0: i32, %arg1: i32, %arg2: i32) -> (i32, i32) {
    %c1_i32 = arith.constant 1 : i32
    %0 = arith.subi %c1_i32, %arg1 : i32
    %1 = arith.muli %arg2, %0 : i32
    %c0_i32 = arith.constant 0 : i32
    %c0_i32_0 = arith.constant 0 : i32
    return %c0_i32, %1 : i32, i32
  }
  func.func @transform_2(%arg0: i32, %arg1: i32, %arg2: i32) -> (i32, i32) {
    %c1_i32 = arith.constant 1 : i32
    %0 = arith.subi %c1_i32, %arg1 : i32
    %1 = arith.muli %arg2, %0 : i32
    %c0_i32 = arith.constant 0 : i32
    %c0_i32_0 = arith.constant 0 : i32
    return %c0_i32, %1 : i32, i32
  }
  func.func @transform_3(%arg0: i32, %arg1: i32, %arg2: i32) -> (i32, i32) {
    %0 = arith.muli %arg2, %arg1 : i32
    %c0_i32 = arith.constant 0 : i32
    return %arg0, %0 : i32, i32
  }
}

</mosaic_0001>

<bundles_post_ra>
// kernel: tpu_custom_call.1
= control target key start
LH: loop header
LB: loop body
LE: loop exit
PB: predicated region body
PF: predicated region fallthrough
CT: control target
= control target key end

     0   :  { %8 = vsyncpa [#allocation6], 0  ;;  %s1026_s0 = inlined_call_operand.hbm [shape: bf16[16,32], index: 0, kind: input, shape index: {}]   ;;  %s1027_s1 = inlined_call_operand.hbm [shape: bf16[32,128], index: 1, kind: input, shape index: {}]   ;;  %s1028_s2 = inlined_call_operand.vmem [shape: f32[1,128], index: 2, kind: input, shape index: {}]   ;;  %s1029_s3 = inlined_call_operand.hbm [shape: f32[16,128], index: 3, kind: output, shape index: {}]  }
   0x1   :  { %10 = vsyncpa [#allocation6 + $0x1], 0 }
   0x2   :  { %11 = vsyncpa [#allocation9], 0 }
   0x3   :  { %13 = vsyncpa [#allocation9 + $0x1], 0 }
   0x4   :  { %14 = vsyncpa [#allocation7], 0 }
   0x5   :  { %16 = vsyncpa [#allocation7 + $0x1], 0  ;;  %s854_s12 = smov 0   ;;  %s856_s13 = smov 0  }
   0x6   :  { %s858_s14 = smov 0   ;;  %s860_s15 = smov 0  }
   0x7   :  { %s862_s16 = smov 0   ;;  %s864_s17 = smov 0  }
   0x8   :  { %s866_s18 = smov 0   ;;  %s868_s19 = smov 0  }
   0x9 LB: > { %s529_s20 = sadd.s32 4294967295, %s825_s19   ;;  %s530_s21 = sadd.s32 4294967294, %s825_s19   ;;  %s825_s19 = sphi %s868_s19, %s22_s19   ;;  %s821_s18 = sphi %s866_s18, %s1046_s18   ;;  %s817_s17 = sphi %s864_s17, %s1045_s17   ;;  %s813_s16 = sphi %s862_s16, %s1044_s16   ;;  %s809_s15 = sphi %s860_s15, %s1043_s15   ;;  %s805_s14 = sphi %s858_s14, %s1042_s14   ;;  %s801_s13 = sphi %s856_s13, %s1041_s13   ;;  %s797_s12 = sphi %s854_s12, %s1040_s12  }
   0xa   : > { %s37_s22 = sadd.s32 1, %s817_s17  ;;  %s41_s23 = sadd.s32 1, %s821_s18 }
   0xb   : > { %p39_p0 = scmp.ge.s32.totalorder %s37_s22, 2  ;;  %s48_s24 = sadd.s32 1, %s805_s14 }
   0xc   : > { %p55_p1 = scmp.ne.s32.totalorder %s805_s14, %s801_s13  ;;  %p56_p2 = scmp.eq.s32.totalorder %s825_s19, 0 }
   0xd   : > { %s1048_s22 = smov (%p39_p0, %s37_s22), 0  ;;  %s1050_s23 = smov (!%p39_p0, %s41_s23), %s821_s18 }
   0xe   : > { %1031 = sst [smem:[#allocation14_spill]] %s1048_s22  ;;  %p907_p3 = por %p56_p2, %p55_p1 }
   0xf   : > { %p61_p4 = scmp.ne.s32.totalorder %s801_s13, %s797_s12  ;;  %p43_p5 = scmp.ge.s32.totalorder %s1050_s23, 2 }
  0x10   : > { %p913_p6 = scmp.eq.s32.totalorder %s529_s20, 0  ;;  %p149_p7 = scmp.eq.s32.totalorder %s529_s20, 3 }
  0x11   : > { %p155_p8 = scmp.eq.s32.totalorder %s530_s21, 3  ;;  %s1052_s23 = smov (%p43_p5, %s1050_s23), 0 }
  0x12   : > { %1034 = sst [smem:[#allocation15_spill]] %s1052_s23  ;;  %p921_p9 = por %p913_p6, %p61_p4 }
  0x13   : > { %p925_p10 = por %p149_p7, %p55_p1  ;;  %s45_s29 = ssub.s32 %s821_s18, %s1052_s23 }
  0x14   : > { %p931_p11 = por %p155_p8, %p61_p4  ;;  %p46_p12 = scmp.eq.s32.totalorder %s45_s29, 0 }
  0x15   : > { %p579_p13 = scmp.lt.s32.totalorder %s825_s19, 4  ;;  %s175_s4 = sand.u32 1, %s805_s14  }
  0x16   : > { %s938_s5 = scalar_select %p46_p12, %s805_s14, %s48_s24  }
  0x17   : > { %s533_s6 = sshll.u32 %s175_s4, 2  ;;  %s534_s7 = sshll.u32 %s821_s18, 2 }
  0x18   : > { %s183_s10 = scalar_lea.hbm %s1026_s0, %s534_s7  ;;  %s179_s11 = scalar_lea.vmem [#allocation5], %s533_s6 }
  0x19   : > { %s187_s20 = sshll.u32 %s179_s11, 4  ;;  %s185_s21 = sshll.u32 %s183_s10, 4  ;;  %s188_s20 = int_to_ptr.vmem [resolvable:$true] %s187_s20  ;;  %s186_s21 = int_to_ptr.hbm [resolvable:$true] %s185_s21 }
  0x1a   : > { %p569_p0 = pnand %p579_p13, %p907_p3  ;;  %p572_p1 = pnand %p579_p13, %p56_p2 }
  0x1b   : > { %p537_p4 = scmp.ge.s32.totalorder %s825_s19, 1  ;;  %s176_s29 = scalar_lea.sflag [#allocation6], %s175_s4 }
  0x1c   : > { %571 = dma.hbm_to_vmem [thread:$0]  (!%p569_p0), %s186_s21, 64, %s188_s20, %s176_s29  }
  0x1d   : > { %p225_p5 = scmp.lt.s32.totalorder %s825_s19, 5  ;;  %s205_s22 = sshll.u32 %s1027_s1, 4  ;;  %s206_s22 = int_to_ptr.hbm [resolvable:$true] %s205_s22 }
  0x1e   : > { %s827_s7 = smov [#allocation8]   ;;  %s828_s8 = smov 64  }
  0x1f   : > { %p226_p7 = pnand %p537_p4, %p225_p5  ;;  %s207_s6 = sshll.u32 %s827_s7, 4  ;;  %s208_s6 = int_to_ptr.vmem [resolvable:$true] %s207_s6 }
  0x20   : > { %s829_s9 = smov 4   ;;  %s954_s25 = sand.u32 (!%p226_p7), 1, %s801_s13  }
  0x21   : > { %574 = dma.hbm_to_vmem [thread:$0]  (!%p572_p1), %s206_s22, 256, %s208_s6, [#allocation9], %s828_s8, %s828_s8, %s829_s9  }
  0x22   : > { %229 = sbr.rel (%p226_p7) target bundleno = 716 (0x2cc), region = 32  ;;  %s538_s4 = sshll.u32 (!%p226_p7), %s954_s25, 2 }
  0x23   : > { %s232_s10 = scalar_lea.sflag (!%p226_p7), [#allocation6], %s954_s25  ;;  %s235_s11 = scalar_lea.vmem (!%p226_p7), [#allocation5], %s538_s4 }
  0x27   : > { %784 = dma.done.wait (%p921_p9), %s232_s10, 64  }
  0x28   : > { %786 = vsyncadd (%p921_p9), %s232_s10, 4294967232 }
  0x29   : > { %788 = dma.done.wait (%p913_p6), [#allocation9], 256  }
  0x2a   : > { %790 = vsyncadd (%p913_p6), [#allocation9], 4294967040  ;;  %s540_s22 = sshll.u32 %s954_s25, 3  ;;  %p290_p2 = scmp.eq.s32.totalorder %s809_s15, 0 }
  0x2b   : > { %s968_s23 = scalar_lea.vmem [#allocation10], %s540_s22  ;;  %vm296_vm0 = vcmask (%p290_p2), 7168   ;;  %v830_v0 = vmov (%p290_p2), -inf   ;;  %v831_v1 = vmov (%p290_p2), 0.0  }
  0x2c   : > { %295 = sbr.rel (!%p290_p2) target bundleno = 49 (0x31), region = 44  ;;  %297 = vst.msk [vmem:[#allocation2] sm:$0xff] (%p290_p2), %vm296_vm0, %v830_v0 }
  0x2d   : > { %298 = vst.msk [vmem:[#allocation3] sm:$0xff] (%p290_p2), %vm296_vm0, %v831_v1 }
  0x31 PF: > { %p542_p3 = scmp.ne.s32.totalorder %s809_s15, 0 }
  0x33   : > { %301 = sbr.rel (%p542_p3) target bundleno = 555 (0x22b), region = 48 }
  0x38   : > { %v559_v2 = vld [vmem:[#allocation8 + $0x8] sm:$0xff]  ;;  %v558_v3 = vld [vmem:[#allocation8] sm:$0xff]  ;;  %v302_v4 = vld [vmem:[%s235_s11] sm:$0xf]  ;;  %vm323_vm1 = vcmask 261120   ;;  %v832_v9 = vmov 0  }
  0x39   : > { %333 = vmatpush.bf16.msra.mxu0 %v559_v2  ;;  %v655_v5 = vld [vmem:[%s1028_s2] ss:$0 sm:$0xff]  ;;  %654 = vset.pattern.permute.xlu0 %v832_v9  ;;  %vm363_vm2 = vcmask 7168   ;;  %v347_v20 = vld [vmem:[#allocation3] sm:$0xff] }
  0x3a   : > { %v343_v10 = vld [vmem:[#allocation2] sm:$0xff] }
  0x3d   : > { %334 = vmatpush.bf16.msra.mxu0 %v558_v3 }
  0x40   : > { %551 = vmatmul.msk.bf16.vlgmr.msra.gmra.mxu0 %vm323_vm1, %v302_v4 }
  0xbd   : > { %v336_v6 = vpop.f32.mrf.mxu0 }
  0xbe   : > { %v337_v7 = vadd.f32 %v655_v5, %v336_v6 }
  0xc0   : > { %342 = vst [vmem:[#allocation4] sm:$0xff] %v337_v7  ;;  %344 = vmax.xlane.f32.xlu0 %v337_v7 }
  0xc5   : > { %v338_v8 = vpop.f32.mrf.mxu0 }
 0x133   : > { %v345_v11 = vpop.xlane.xlu0 %344 }
 0x134   : > { %v346_v12 = vmax.f32 %v343_v10, %v345_v11 }
 0x136   : > { %v348_v13 = vsub.f32 %v343_v10, %v346_v12  ;;  %365 = vst.msk [vmem:[#allocation2] sm:$0xff] %vm363_vm2, %v346_v12  ;;  %354 = vperm.xlu0 %654, %v346_v12  }
 0x138   : > { %v349_v18 = vmul.f32 1.442695, %v348_v13 }
 0x1a8   : > { %v355_v14 = vpop.permute.xlu0 %354 }
 0x1a9   : > { %v357_v15 = vsub.f32 %v337_v7, %v355_v14 }
 0x1ab   : > { %v358_v16 = vmul.f32 1.442695, %v357_v15 }
 0x1ad   : > { %656 = vpow2.f32 %v358_v16 }
 0x1ae   : > { %658 = vpow2.f32 %v349_v18 }
 0x1b3   : > { %v657_v17 = vpop.eup %656 }
 0x1b4   : > { %360 = vadd.xlane.f32.xlu1 %v657_v17  ;;  %v659_v19 = vpop.eup %658 }
 0x1b5   : > { %v351_v21 = vmul.f32 %v659_v19, %v347_v20 }
 0x227   : > { %v361_v22 = vpop.xlane.xlu1 %360 }
 0x228   : > { %v362_v23 = vadd.f32 %v361_v22, %v351_v21 }
 0x22a   : > { %364 = vst.msk [vmem:[#allocation3] sm:$0xff] %vm363_vm2, %v362_v23 }
 0x22b PF: > { %367 = sbr.rel (!%p290_p2) target bundleno = 574 (0x23e), region = 52  ;;  %v368_v26 = vld [vmem:[#allocation2] sm:$0xff] (%p290_p2)  ;;  %vm373_vm3 = vcmask (%p290_p2), 7168  }
 0x231   : > { %v369_v24 = vld [vmem:[#allocation3] sm:$0xff] }
 0x232   : > { %660 = vlog2.f32 %v369_v24 }
 0x238   : > { %v661_v25 = vpop.eup %660 }
 0x239   : > { %v371_v27 = vmul.f32 0.6931472, %v661_v25 }
 0x23b   : > { %v372_v28 = vadd.f32 %v371_v27, %v368_v26 }
 0x23d   : > { %374 = vst.msk [vmem:[#allocation2] sm:$0xff] %vm373_vm3, %v372_v28 }
 0x23e PF: > { %p552_p6 = scmp.ne.s32.totalorder %s809_s15, 1 }
 0x240   : > { %378 = sbr.rel (%p552_p6) target bundleno = 701 (0x2bd), region = 56 }
 0x245   : > { %v382_v29 = vld [vmem:[#allocation2] sm:$0xff]  ;;  %v833_v30 = vmov 0   ;;  %v381_v31 = vld [vmem:[#allocation4] sm:$0xff] }
 0x246   : > { %662 = vset.pattern.permute.xlu0 %v833_v30 }
 0x247   : > { %385 = vperm.xlu0 %662, %v382_v29  }
 0x2b9   : > { %v386_v32 = vpop.permute.xlu0 %385 }
 0x2ba   : > { %v388_v33 = vsub.f32 %v381_v31, %v386_v32 }
 0x2bc   : > { %389 = vst [vmem:[%s968_s23] sm:$0xff] %v388_v33 }
 0x2bd PF: > { %s554_s20 = sshll.u32 %s813_s16, 3  ;;  %s405_s24 = sshll.u32 %s968_s23, 4  ;;  %s406_s24 = int_to_ptr.vmem [resolvable:$true] %s405_s24 }
 0x2be   : > { %s403_s15 = scalar_lea.hbm %s1029_s3, %s554_s20  ;;  %s391_s6 = scalar_lea.sflag [#allocation7], %s954_s25 }
 0x2bf   : > { %s407_s7 = sshll.u32 %s403_s15, 4  ;;  %s743_s16 = scalar_lea.hbm %s1029_s3, 16  ;;  %s408_s7 = int_to_ptr.hbm [resolvable:$true] %s407_s7 }
 0x2c0   : > { %s737_s8 = sshra.s32 %s408_s7, 4  ;;  %s738_s8 = int_to_ptr.hbm [resolvable:$true] %s737_s8 }
 0x2c1   : > { %s739_s9 = scalar_lea.hbm %s738_s8, 8  ;;  %p744_p13 = scmp.lt.s32.totalorder %s738_s8, %s1029_s3 }
 0x2c2   : > { %p740_p8 = scmp.ne.s32.totalorder %s738_s8, %s739_s9  ;;  %p745_p0 = scmp.lt.s32.totalorder %s743_s16, %s739_s9 }
 0x2c4   : > { %p741_p9 = pnand %p740_p8, %p925_p10  ;;  %p746_p1 = por %p745_p0, %p744_p13 }
 0x2c6   : > { %p742_p12 = pneg %p741_p9 }
 0x2c8   : > { %p747_p4 = pnand %p746_p1, %p742_p12 }
 0x2ca   : > { %750 = shalt.err (!%p747_p4)
}
 0x2cb   : > { %566 = dma.vmem_to_hbm [thread:$0]  (%p925_p10), %s406_s24, 128, %s408_s7, %s391_s6  }
 0x2cc PF: > { %p582_p5 = scmp.ge.s32.totalorder %s825_s19, 2  ;;  %s419_s25 = sand.u32 1, %s797_s12  }
 0x2cd   : > { %s420_s23 = scalar_lea.sflag [#allocation7], %s419_s25 }
 0x2ce   : > { %p576_p7 = pnand %p582_p5, %p931_p11 }
 0x2d0   : > { %p577_p2 = pneg %p576_p7 }
 0x2d2   : > { %792 = dma.done.wait (%p577_p2), %s420_s23, 128  }
 0x2d3   : > { %794 = vsyncadd (%p577_p2), %s420_s23, 4294967168  ;;  %s22_s19 = sadd.s32 1, %s825_s19   ;;  %s1038_s28 = sld [smem:[#allocation14_spill]] }
 0x2d4   : > { %p19_p3 = scmp.ge.s32.totalorder %s22_s19, 6   ;;  %s1039_s26 = sld [smem:[#allocation15_spill]] }
 0x2d5   : > { %s1040_s12 = smov %s801_s13  ;;  %s1041_s13 = smov %s805_s14 }
 0x2d6   : > { %s1042_s14 = smov %s938_s5  ;;  %s1043_s15 = smov %s817_s17 }
 0x2d7   : > { %s1044_s16 = smov %s821_s18  ;;  %21 = sbr.rel (!%p19_p3) target bundleno = 9 (0x9), region = 111 }
 0x2d9   : > { %s1045_s17 = smov %s1038_s28 }
 0x2da   : > { %s1046_s18 = smov %s1039_s26 }
 0x2dc   :  { %426 = vsyncpa [#allocation6], 1 }
 0x2dd   :  { %428 = vsyncpa [#allocation6 + $0x1], 1 }
 0x2de   :  { %429 = vsyncpa [#allocation9], 1 }
 0x2df   :  { %431 = vsyncpa [#allocation9 + $0x1], 1 }
 0x2e0   :  { %432 = vsyncpa [#allocation7], 1 }
 0x2e1   :  { %434 = vsyncpa [#allocation7 + $0x1], 1 }

</bundles_post_ra>
